<compile_context>
chip_gen: v6e
topology: v6e:2x2x1
jax: 0.10.0
libtpu: 0.0.40
codegen_flags: <defaults>
</compile_context>

<pallas_src>
import functools
import math

import jax
import jax.numpy as jnp
import numpy as np
from jax import lax
from jax.experimental import pallas as pl
from jax.experimental.pallas import tpu as pltpu


# ----------------------------------------------------------------------------
# Group (cyclic rotation group C_n) -- mirrors the PyTorch tutorial group API.
# ----------------------------------------------------------------------------
class CyclicGroup:
    def __init__(self, order):
        assert order > 1
        self.order = order
        self.identity = jnp.asarray(0.0, jnp.float32)

    def elements(self):
        return jnp.linspace(
            0.0, 2.0 * math.pi * (self.order - 1) / self.order, self.order,
            dtype=jnp.float32)

    def product(self, h1, h2):
        return jnp.remainder(h1 + h2, 2.0 * math.pi)

    def inverse(self, h):
        return jnp.remainder(-h, 2.0 * math.pi)

    def matrix_representation(self, h):
        c, s = jnp.cos(h), jnp.sin(h)
        return jnp.array([[c, -s], [s, c]], dtype=jnp.float32)

    def left_action_on_R2(self, h, x):
        return jnp.tensordot(self.matrix_representation(h), x, axes=1)

    def normalize_group_elements(self, h):
        largest = 2.0 * math.pi * (self.order - 1) / self.order
        return (2.0 * h / largest) - 1.0


# ----------------------------------------------------------------------------
# Trilinear interpolation (grid_sample-like, align_corners=True, zeros pad).
#   signal: [N, D, H, W]
#   grid:   [3, Dp, Hp, Wp]   grid[0]->H axis, grid[1]->W axis, grid[2]->D axis
# ----------------------------------------------------------------------------
def trilinear_interpolation(signal, grid):
    N, D, H, W = signal.shape
    fh = (grid[0] + 1.0) * 0.5 * (H - 1)
    fw = (grid[1] + 1.0) * 0.5 * (W - 1)
    fd = (grid[2] + 1.0) * 0.5 * (D - 1)
    h0, w0, d0 = jnp.floor(fh), jnp.floor(fw), jnp.floor(fd)
    out = jnp.zeros((N,) + grid.shape[1:], signal.dtype)
    for dh in (0, 1):
        for dw in (0, 1):
            for dd in (0, 1):
                hi, wi, di = h0 + dh, w0 + dw, d0 + dd
                wgt = ((1.0 - jnp.abs(fh - hi)) *
                       (1.0 - jnp.abs(fw - wi)) *
                       (1.0 - jnp.abs(fd - di)))
                valid = ((hi >= 0) & (hi <= H - 1) &
                         (wi >= 0) & (wi <= W - 1) &
                         (di >= 0) & (di <= D - 1))
                wgt = jnp.where(valid, wgt, 0.0)
                hic = jnp.clip(hi, 0, H - 1).astype(jnp.int32)
                wic = jnp.clip(wi, 0, W - 1).astype(jnp.int32)
                dic = jnp.clip(di, 0, D - 1).astype(jnp.int32)
                vals = signal[:, dic, hic, wic]            # [N, Dp, Hp, Wp]
                out = out + wgt[None] * vals
    return out


# ----------------------------------------------------------------------------
# InterpolativeGroupKernel: transformed grid + kernel sampling (plain JAX glue)
# ----------------------------------------------------------------------------
def create_transformed_grid_R2xH(group, kernel_size):
    lin = jnp.linspace(-1.0, 1.0, kernel_size, dtype=jnp.float32)
    grid_R2 = jnp.stack(jnp.meshgrid(lin, lin, indexing="ij"))      # [2, k, k]
    grid_H = group.elements()                                        # [G]
    G = grid_H.shape[0]
    inv = group.inverse(grid_H)
    t_R2 = jnp.stack([group.left_action_on_R2(inv[i], grid_R2) for i in range(G)],
                     axis=1)                                         # [2, G, k, k]
    t_H = jnp.stack([group.product(inv[i], grid_H) for i in range(G)],
                    axis=1)                                          # [G, G]
    t_H = group.normalize_group_elements(t_H)
    r2_part = jnp.tile(t_R2.reshape(2, G, 1, kernel_size, kernel_size),
                       (1, 1, G, 1, 1))
    h_part = jnp.tile(t_H.reshape(1, G, G, 1, 1),
                      (1, 1, 1, kernel_size, kernel_size))
    return jnp.concatenate([r2_part, h_part], axis=0)                # [3, G, G, k, k]


def sample_group_kernels(weight, transformed_grid, out_channels, in_channels,
                         num_elements, kernel_size):
    w = weight.reshape(out_channels * in_channels, num_elements,
                       kernel_size, kernel_size)
    tw = jnp.stack([trilinear_interpolation(w, transformed_grid[:, i])
                    for i in range(num_elements)])                   # [G, O*I, G, k, k]
    tw = tw.reshape(num_elements, out_channels, in_channels, num_elements,
                    kernel_size, kernel_size)
    tw = jnp.transpose(tw, (1, 0, 2, 3, 4, 5))                       # [O, G, I, G, k, k]
    return tw


# ----------------------------------------------------------------------------
# Pallas conv2d kernel ('same' padding, stride 1), lane-dense formulation.
# ----------------------------------------------------------------------------
def _gconv_matmul_kernel(x_ref, w_ref, m_ref, o_ref, *, k, pad, W, nq):
    """One grid step: one batch image, one Cout tile.

    x_ref: [1, Cin*|G|, H*W]    flat input image (native NCHW, no HBM padding)
    w_ref: [TCO, k*k*Cin*|G|]   matmul-ready weight slab (rows ordered kh,kw,ci)
    m_ref: [k*k, H*W]           static 0/1 halo masks, one per tap
    o_ref: [1, TCO, H*W]        flattened-spatial (lane-dense) output
    """
    x = x_ref[0]                                          # [Cin, NQ]
    rows = []
    for kh in range(k):
        for kw in range(k):
            t = kh * k + kw
            # Flat lane shift of this tap on the flattened image.
            shift = (kh - pad) * W + (kw - pad)
            if shift % nq == 0:
                xt = x
            else:
                # rolled[q] = x[(q + shift) mod nq]  (XLU lane rotation).
                xt = pltpu.roll(x, (-shift) % nq, axis=1)
            # Zero out reads that fall into the 'same'-padding halo (this also
            # covers every circularly-wrapped position).
            rows.append(xt * m_ref[t:t + 1, :])
    patch = jnp.concatenate(rows, axis=0)                 # im2col: [k*k*Cin, NQ]
    # Single fused contraction on the MXU, f32 accumulation.
    acc = jnp.dot(w_ref[...], patch, preferred_element_type=jnp.float32)
    o_ref[0] = acc.astype(o_ref.dtype)


def gconv2d_pallas(x_nchw, kernels_oihw, padding, *, compute_dtype=jnp.float32):
    """2-D 'same' convolution, stride 1, NCHW in / NCHW out (no transposes)."""
    B, Cin, H, W = x_nchw.shape
    Cout, Cin2, k, k2 = kernels_oihw.shape
    assert Cin2 == Cin and k2 == k
    # TODO(synk): only 'same' padding (2*padding == kernel_size-1) is
    # implemented in the Pallas fast path (that is what the tutorial uses).
    assert 2 * padding == k - 1, "Pallas path requires 'same' padding"
    nq = H * W                                   # flattened spatial = lane axis

    # Free, contiguous reshape -- no transpose, no padded HBM copy.
    x_flat = x_nchw.reshape(B, Cin, nq).astype(compute_dtype)

    # Matmul-ready weight slab, rows ordered (kh, kw, ci) to match the im2col.
    w2 = jnp.transpose(kernels_oihw, (0, 2, 3, 1)).reshape(Cout, k * k * Cin)
    w2 = w2.astype(compute_dtype)

    # Static halo masks: which taps read the zero 'same' padding.
    qq = np.arange(nq)
    ho, wo = qq // W, qq % W
    masks_np = np.zeros((k * k, nq), np.float32)
    for kh in range(k):
        for kw in range(k):
            hv, wv = ho + kh - padding, wo + kw - padding
            masks_np[kh * k + kw] = ((hv >= 0) & (hv < H) & (wv >= 0) & (wv < W))
    masks = jnp.asarray(masks_np, dtype=compute_dtype)

    # Cout tiling: one tile at this model size; multiple parallel tiles when
    # Cout*|G| grows.  (For large images, strip H with a halo for v7x VMEM.)
    tco = 128 if Cout % 128 == 0 else Cout
    kdim = k * k * Cin
    itemsize = np.dtype(compute_dtype).itemsize
    cost = pl.CostEstimate(
        flops=2 * B * Cout * kdim * nq,
        transcendentals=0,
        bytes_accessed=(B * Cin * nq + Cout * kdim + k * k * nq) * itemsize
                       + B * Cout * nq * 4)

    out_flat = pl.pallas_call(
        functools.partial(_gconv_matmul_kernel, k=k, pad=padding, W=W, nq=nq),
        out_shape=jax.ShapeDtypeStruct((B, Cout, nq), jnp.float32),
        grid=(B, Cout // tco),
        in_specs=[
            pl.BlockSpec((1, Cin, nq), lambda b, j: (b, 0, 0)),
            pl.BlockSpec((tco, kdim), lambda b, j: (j, 0)),    # resident weights
            pl.BlockSpec((k * k, nq), lambda b, j: (0, 0)),    # resident masks
        ],
        out_specs=pl.BlockSpec((1, tco, nq), lambda b, j: (b, j, 0)),
        compiler_params=pltpu.CompilerParams(
            dimension_semantics=("parallel", "parallel")),
        cost_estimate=cost,
    )(x_flat, w2, masks)

    return out_flat.reshape(B, Cout, H, W)       # free contiguous reshape


# ----------------------------------------------------------------------------
# GroupConvolution forward.
# ----------------------------------------------------------------------------
class GroupConvolution:
    def __init__(self, group, in_channels, out_channels, kernel_size, padding, key,
                 compute_dtype=jnp.float32):
        self.group = group
        self.in_channels = in_channels
        self.out_channels = out_channels
        self.kernel_size = kernel_size
        self.padding = padding
        self.compute_dtype = compute_dtype
        self.num_elements = int(group.elements().shape[0])
        # kaiming_uniform_(a=sqrt(5)) => bound = 1/sqrt(fan_in),
        # fan_in = in_channels * |G| * k * k
        fan_in = in_channels * self.num_elements * kernel_size * kernel_size
        bound = 1.0 / math.sqrt(fan_in)
        self.weight = jax.random.uniform(
            key,
            (out_channels, in_channels, self.num_elements, kernel_size, kernel_size),
            minval=-bound, maxval=bound, dtype=jnp.float32)
        self.transformed_grid = create_transformed_grid_R2xH(group, kernel_size)

    def __call__(self, x):
        # x: [B, in_channels, |G|, H, W]
        x_img = x.reshape(-1, x.shape[1] * x.shape[2], x.shape[3], x.shape[4])
        kernels = sample_group_kernels(
            self.weight, self.transformed_grid, self.out_channels,
            self.in_channels, self.num_elements, self.kernel_size)
        kernels = kernels.reshape(self.out_channels * self.num_elements,
                                  self.in_channels * self.num_elements,
                                  self.kernel_size, self.kernel_size)
        y = gconv2d_pallas(x_img, kernels, self.padding,
                           compute_dtype=self.compute_dtype)
        # Mirror PyTorch's final .view(-1, out, |G|, shape[-1], shape[-2]);
        # for square spatial dims this is identical.
        y = y.reshape(-1, self.out_channels, self.num_elements,
                      y.shape[-1], y.shape[-2])
        return y, x_img, kernels


if __name__ == "__main__":
    key = jax.random.PRNGKey(0)
    k_w, k_x = jax.random.split(key)

    group = CyclicGroup(order=4)
    B, in_ch, out_ch, ksize, pad, HW = 2, 2, 4, 3, 1, 16

    gconv = GroupConvolution(group, in_ch, out_ch, ksize, pad, k_w)
    x = jax.random.normal(k_x, (B, in_ch, group.order, HW, HW), dtype=jnp.float32)

    y, x_img, kernels = gconv(x)
    y = jax.block_until_ready(y)
    assert y.shape == (B, out_ch, group.order, HW, HW)

    # Reference check of the Pallas conv hot path against lax conv.
    y_ref = lax.conv_general_dilated(
        x_img, kernels, window_strides=(1, 1), padding=[(pad, pad), (pad, pad)],
        dimension_numbers=("NCHW", "OIHW", "NCHW"))
    y_ref = y_ref.reshape(-1, out_ch, group.order, y_ref.shape[-1], y_ref.shape[-2])
    np.testing.assert_allclose(np.asarray(y), np.asarray(y_ref),
                               rtol=1e-3, atol=1e-3)

    print("KERNEL_OK")
</pallas_src>

<mosaic_0001>
module attributes {stable_mosaic.version = 11 : i64} {
  func.func @_gconv_matmul_kernel(%arg0: i32, %arg1: i32, %arg2: memref<1x8x256xf32, #tpu.memory_space<vmem>>, %arg3: memref<16x72xf32, #tpu.memory_space<vmem>>, %arg4: memref<9x256xf32, #tpu.memory_space<vmem>>, %arg5: memref<1x16x256xf32, #tpu.memory_space<vmem>>) attributes {dimension_semantics = [#tpu.dimension_semantics<parallel>, #tpu.dimension_semantics<parallel>], iteration_bounds = array<i64: 2, 1>, scalar_prefetch = 0 : i64, scratch_operands = 0 : i64, tpu.core_type = #tpu.core_type<tc>, window_params = [{transform_indices = @transform_0, window_bounds = array<i64: 1, 8, 256>}, {transform_indices = @transform_1, window_bounds = array<i64: 16, 72>}, {pipeline_mode = #tpu.pipeline_mode<synchronous>, transform_indices = @transform_2, window_bounds = array<i64: 9, 256>}, {transform_indices = @transform_3, window_bounds = array<i64: 1, 16, 256>}]} {
    %c0 = arith.constant 0 : index
    %c0_0 = arith.constant 0 : index
    %c0_1 = arith.constant 0 : index
    %0 = vector.load %arg2[%c0, %c0_0, %c0_1] : memref<1x8x256xf32, #tpu.memory_space<vmem>>, vector<1x8x256xf32>
    %1 = vector.shape_cast %0 : vector<1x8x256xf32> to vector<8x256xf32>
    %c17_i32 = arith.constant 17 : i32
    %2 = tpu.dynamic_rotate %1 by %c17_i32 dim 1 : vector<8x256xf32>, i32 -> vector<8x256xf32>
    %c0_2 = arith.constant 0 : index
    %c0_3 = arith.constant 0 : index
    %3 = vector.load %arg4[%c0_2, %c0_3] : memref<9x256xf32, #tpu.memory_space<vmem>>, vector<1x256xf32>
    %4 = vector.broadcast %3 : vector<1x256xf32> to vector<8x256xf32>
    %5 = arith.mulf %2, %4 : vector<8x256xf32>
    %c16_i32 = arith.constant 16 : i32
    %6 = tpu.dynamic_rotate %1 by %c16_i32 dim 1 : vector<8x256xf32>, i32 -> vector<8x256xf32>
    %c1 = arith.constant 1 : index
    %c0_4 = arith.constant 0 : index
    %7 = vector.load %arg4[%c1, %c0_4] : memref<9x256xf32, #tpu.memory_space<vmem>>, vector<1x256xf32>
    %8 = vector.broadcast %7 : vector<1x256xf32> to vector<8x256xf32>
    %9 = arith.mulf %6, %8 : vector<8x256xf32>
    %c15_i32 = arith.constant 15 : i32
    %10 = tpu.dynamic_rotate %1 by %c15_i32 dim 1 : vector<8x256xf32>, i32 -> vector<8x256xf32>
    %c2 = arith.constant 2 : index
    %c0_5 = arith.constant 0 : index
    %11 = vector.load %arg4[%c2, %c0_5] : memref<9x256xf32, #tpu.memory_space<vmem>>, vector<1x256xf32>
    %12 = vector.broadcast %11 : vector<1x256xf32> to vector<8x256xf32>
    %13 = arith.mulf %10, %12 : vector<8x256xf32>
    %c1_i32 = arith.constant 1 : i32
    %14 = tpu.dynamic_rotate %1 by %c1_i32 dim 1 : vector<8x256xf32>, i32 -> vector<8x256xf32>
    %c3 = arith.constant 3 : index
    %c0_6 = arith.constant 0 : index
    %15 = vector.load %arg4[%c3, %c0_6] : memref<9x256xf32, #tpu.memory_space<vmem>>, vector<1x256xf32>
    %16 = vector.broadcast %15 : vector<1x256xf32> to vector<8x256xf32>
    %17 = arith.mulf %14, %16 : vector<8x256xf32>
    %c4 = arith.constant 4 : index
    %c0_7 = arith.constant 0 : index
    %18 = vector.load %arg4[%c4, %c0_7] : memref<9x256xf32, #tpu.memory_space<vmem>>, vector<1x256xf32>
    %19 = vector.broadcast %18 : vector<1x256xf32> to vector<8x256xf32>
    %20 = arith.mulf %1, %19 : vector<8x256xf32>
    %c255_i32 = arith.constant 255 : i32
    %21 = tpu.dynamic_rotate %1 by %c255_i32 dim 1 : vector<8x256xf32>, i32 -> vector<8x256xf32>
    %c5 = arith.constant 5 : index
    %c0_8 = arith.constant 0 : index
    %22 = vector.load %arg4[%c5, %c0_8] : memref<9x256xf32, #tpu.memory_space<vmem>>, vector<1x256xf32>
    %23 = vector.broadcast %22 : vector<1x256xf32> to vector<8x256xf32>
    %24 = arith.mulf %21, %23 : vector<8x256xf32>
    %c241_i32 = arith.constant 241 : i32
    %25 = tpu.dynamic_rotate %1 by %c241_i32 dim 1 : vector<8x256xf32>, i32 -> vector<8x256xf32>
    %c6 = arith.constant 6 : index
    %c0_9 = arith.constant 0 : index
    %26 = vector.load %arg4[%c6, %c0_9] : memref<9x256xf32, #tpu.memory_space<vmem>>, vector<1x256xf32>
    %27 = vector.broadcast %26 : vector<1x256xf32> to vector<8x256xf32>
    %28 = arith.mulf %25, %27 : vector<8x256xf32>
    %c240_i32 = arith.constant 240 : i32
    %29 = tpu.dynamic_rotate %1 by %c240_i32 dim 1 : vector<8x256xf32>, i32 -> vector<8x256xf32>
    %c7 = arith.constant 7 : index
    %c0_10 = arith.constant 0 : index
    %30 = vector.load %arg4[%c7, %c0_10] : memref<9x256xf32, #tpu.memory_space<vmem>>, vector<1x256xf32>
    %31 = vector.broadcast %30 : vector<1x256xf32> to vector<8x256xf32>
    %32 = arith.mulf %29, %31 : vector<8x256xf32>
    %c239_i32 = arith.constant 239 : i32
    %33 = tpu.dynamic_rotate %1 by %c239_i32 dim 1 : vector<8x256xf32>, i32 -> vector<8x256xf32>
    %c8 = arith.constant 8 : index
    %c0_11 = arith.constant 0 : index
    %34 = vector.load %arg4[%c8, %c0_11] : memref<9x256xf32, #tpu.memory_space<vmem>>, vector<1x256xf32>
    %35 = vector.broadcast %34 : vector<1x256xf32> to vector<8x256xf32>
    %36 = arith.mulf %33, %35 : vector<8x256xf32>
    %37 = tpu.concatenate %5, %9, %13, %17, %20, %24, %28, %32, %36 in 0 : vector<8x256xf32>, vector<8x256xf32>, vector<8x256xf32>, vector<8x256xf32>, vector<8x256xf32>, vector<8x256xf32>, vector<8x256xf32>, vector<8x256xf32>, vector<8x256xf32> -> vector<72x256xf32>
    %c0_12 = arith.constant 0 : index
    %c0_13 = arith.constant 0 : index
    %38 = vector.load %arg3[%c0_12, %c0_13] : memref<16x72xf32, #tpu.memory_space<vmem>>, vector<16x72xf32>
    %cst = arith.constant dense<0.000000e+00> : vector<16x256xf32>
    %39 = tpu.matmul %38, %37, %cst {dimension_numbers = #tpu.dot_dimension_numbers<[1], [0], [0], [1], [0, 0, 1, 1], [], []>} : vector<16x72xf32>, vector<72x256xf32>, vector<16x256xf32> -> vector<16x256xf32>
    %c0_14 = arith.constant 0 : index
    %c0_15 = arith.constant 0 : index
    %c0_16 = arith.constant 0 : index
    %40 = vector.load %arg5[%c0_14, %c0_15, %c0_16] : memref<1x16x256xf32, #tpu.memory_space<vmem>>, vector<1x16x256xf32>
    %41 = vector.shape_cast %40 : vector<1x16x256xf32> to vector<16x256xf32>
    %42 = vector.shape_cast %39 : vector<16x256xf32> to vector<1x16x256xf32>
    tpu.vector_store %arg5[%c0_14, %c0_15, %c0_16], %42 {strides = array<i32>} : memref<1x16x256xf32, #tpu.memory_space<vmem>>, vector<1x16x256xf32>,
    return
  }
  func.func @transform_0(%arg0: i32, %arg1: i32) -> (i32, i32, i32) {
    %c0_i32 = arith.constant 0 : i32
    %c0_i32_0 = arith.constant 0 : i32
    %c0_i32_1 = arith.constant 0 : i32
    return %arg0, %c0_i32, %c0_i32_0 : i32, i32, i32
  }
  func.func @transform_1(%arg0: i32, %arg1: i32) -> (i32, i32) {
    %c0_i32 = arith.constant 0 : i32
    %c0_i32_0 = arith.constant 0 : i32
    return %arg1, %c0_i32 : i32, i32
  }
  func.func @transform_2(%arg0: i32, %arg1: i32) -> (i32, i32) {
    %c0_i32 = arith.constant 0 : i32
    %c0_i32_0 = arith.constant 0 : i32
    %c0_i32_1 = arith.constant 0 : i32
    return %c0_i32, %c0_i32_0 : i32, i32
  }
  func.func @transform_3(%arg0: i32, %arg1: i32) -> (i32, i32, i32) {
    %c0_i32 = arith.constant 0 : i32
    %c0_i32_0 = arith.constant 0 : i32
    return %arg0, %arg1, %c0_i32 : i32, i32, i32
  }
}

</mosaic_0001>

<bundles_post_ra>
// kernel: tpu_custom_call.1
= control target key start
LH: loop header
LB: loop body
LE: loop exit
PB: predicated region body
PF: predicated region fallthrough
CT: control target
= control target key end

     0   :  { %8 = vsyncpa [#allocation3], 0  ;;  %s1238_s0 = inlined_call_operand.hbm [shape: f32[2,8,256], index: 0, kind: input, shape index: {}]   ;;  %s1239_s1 = inlined_call_operand.hbm [shape: f32[16,72], index: 1, kind: input, shape index: {}]   ;;  %s1240_s2 = inlined_call_operand.hbm [shape: f32[9,256], index: 2, kind: input, shape index: {}]   ;;  %s1241_s3 = inlined_call_operand.hbm [shape: f32[2,16,256], index: 3, kind: output, shape index: {}]  }
   0x1   :  { %10 = vsyncpa [#allocation3 + $0x1], 0 }
   0x2   :  { %11 = vsyncpa [#allocation6], 0 }
   0x3   :  { %12 = vsyncpa [#allocation4], 0 }
   0x4   :  { %14 = vsyncpa [#allocation4 + $0x1], 0  ;;  %s988_s12 = smov 0   ;;  %s990_s13 = smov 0  }
   0x5   :  { %s992_s14 = smov 0   ;;  %s994_s15 = smov 0  }
   0x6   :  { %s996_s16 = smov 0   ;;  %s998_s17 = smov 0  }
   0x7 LB: > { %s646_s18 = sadd.s32 4294967295, %s948_s17   ;;  %s647_s19 = sadd.s32 4294967294, %s948_s17   ;;  %s948_s17 = sphi %s998_s17, %s20_s17   ;;  %s944_s16 = sphi %s996_s16, %s1261_s16   ;;  %s940_s15 = sphi %s994_s15, %s1260_s15   ;;  %s936_s14 = sphi %s992_s14, %s1259_s14   ;;  %s932_s13 = sphi %s990_s13, %s1258_s13   ;;  %s928_s12 = sphi %s988_s12, %s1257_s12  }
   0x8   : > { %p52_p0 = scmp.ne.s32.totalorder %s932_s13, %s928_s12  ;;  %p1022_p1 = scmp.eq.s32.totalorder %s646_s18, 0 }
   0x9   : > { %p1026_p2 = scmp.eq.s32.totalorder %s646_s18, 1  ;;  %p131_p3 = scmp.eq.s32.totalorder %s647_s19, 1 }
   0xa   : > { %s1245_s20 = scalar_select %p1022_p1, 1, 0 }
   0xb   : > { %p1032_p4 = por %p1022_p1, %p52_p0  ;;  %p648_p5 = scmp.ge.s32.totalorder %s948_s17, 1 }
   0xc   : > { %p1037_p6 = por %p131_p3, %p52_p0  ;;  %p138_p7 = scmp.lt.s32.totalorder %s948_s17, 3 }
   0xd   : > { %s1247_s22 = scalar_select %p1032_p4, 1, 0 }
   0xe   : > { %s1248_s23 = scalar_select %p1037_p6, 1, 0 }
   0xf   : > { %p1042_p8 = pnand %p648_p5, %p138_p7  ;;  %s950_s25 = smov [#allocation5]  }
  0x10   : > { %s153_s26 = sshll.u32 %s950_s25, 4  ;;  %s951_s28 = smov [#allocation7]   ;;  %s154_s26 = int_to_ptr.vmem [resolvable:$true] %s153_s26 }
  0x11   : > { %p699_p9 = pneg %p1042_p8  ;;  %s166_s29 = sshll.u32 %s951_s28, 4  ;;  %s167_s29 = int_to_ptr.vmem [resolvable:$true] %s166_s29 }
  0x12   : > { %s795_s30 = scalar_lea.vmem %s154_s26, 256  ;;  %p803_p5 = scmp.lt.s32.totalorder %s154_s26, %s154_s26 }
  0x13   : > { %p1051_p11 = pnand %p699_p9, %p1022_p1  ;;  %p796_p13 = scmp.ne.s32.totalorder %s154_s26, %s795_s30 }
  0x14   : > { %p804_p7 = scmp.lt.s32.totalorder %s795_s30, %s795_s30 }
  0x15   : > { %p786_p12 = pneg %p1051_p11 }
  0x16   : > { %p805_p10 = por %p804_p7, %p803_p5 }
  0x17   : > { %p798_p0 = pnand %p796_p13, %p786_p12 }
  0x19   : > { %p799_p3 = pneg %p798_p0 }
  0x1b   : > { %p806_p9 = pnand %p805_p10, %p799_p3 }
  0x1d   : > { %809 = shalt.err (!%p806_p9)
}
  0x1e   : > { %s952_s4 = smov 128   ;;  %s953_s5 = smov 8  }
  0x1f   : > { %702 = dma.hbm_to_vmem [thread:$0]  (!%p1051_p11), %s1239_s1, 256, %s154_s26, [#allocation6], %s952_s4, %s952_s4, %s953_s5  }
  0x20   : > { %s821_s8 = scalar_lea.vmem %s167_s29, 512  ;;  %p829_p1 = scmp.lt.s32.totalorder %s167_s29, %s167_s29 }
  0x21   : > { %p822_p6 = scmp.ne.s32.totalorder %s167_s29, %s821_s8  ;;  %p830_p4 = scmp.lt.s32.totalorder %s821_s8, %s821_s8 }
  0x23   : > { %p824_p13 = pnand %p822_p6, %p786_p12  ;;  %p831_p5 = por %p830_p4, %p829_p1 }
  0x25   : > { %p825_p0 = pneg %p824_p13 }
  0x27   : > { %p832_p10 = pnand %p831_p5, %p825_p0 }
  0x29   : > { %835 = shalt.err (!%p832_p10)
}
  0x2a   : > { %s954_s9 = smov 256   ;;  %s955_s10 = smov 16  }
  0x2b   : > { %705 = dma.hbm_to_vmem [thread:$0]  (!%p1051_p11), %s1240_s2, 512, %s167_s29, [#allocation6], %s954_s9, %s954_s9, %s955_s10  }
  0x2c   : > { %s32_s19 = sadd.s32 1, %s944_s16  ;;  %s39_s25 = sadd.s32 1, %s936_s14 }
  0x2d   : > { %p34_p1 = scmp.ge.s32.totalorder %s32_s19, 2  ;;  %p46_p4 = scmp.ne.s32.totalorder %s936_s14, %s932_s13 }
  0x2e   : > { %p47_p6 = scmp.eq.s32.totalorder %s948_s17, 0  ;;  %p716_p12 = scmp.lt.s32.totalorder %s948_s17, 2 }
  0x2f   : > { %s1263_s19 = smov (%p34_p1, %s32_s19), 0  ;;  %p1083_p7 = por %p1026_p2, %p46_p4 }
  0x30   : > { %p48_p3 = por %p47_p6, %p46_p4  ;;  %s36_s27 = ssub.s32 %s944_s16, %s1263_s19 }
  0x31   : > { %s180_s28 = sand.u32 1, %s936_s14   ;;  %p37_p9 = scmp.eq.s32.totalorder %s36_s27, 0 }
  0x32   : > { %s652_s29 = sshll.u32 %s180_s28, 4  ;;  %s667_s30 = sshll.u32 %s944_s16, 8 }
  0x33   : > { %s1092_s4 = scalar_select %p37_p9, %s936_s14, %s39_s25  }
  0x34   : > { %s190_s7 = scalar_lea.hbm %s1238_s0, %s667_s30  ;;  %s184_s8 = scalar_lea.vmem [#allocation2], %s652_s29 }
  0x35   : > { %s192_s9 = sshll.u32 %s184_s8, 4  ;;  %p1099_p11 = pnand %p716_p12, %p48_p3  ;;  %s193_s9 = int_to_ptr.vmem [resolvable:$true] %s192_s9 }
  0x36   : > { %s181_s10 = scalar_lea.sflag [#allocation3], %s180_s28  ;;  %s849_s11 = scalar_lea.vmem %s193_s9, 256 }
  0x37   : > { %p838_p2 = pneg %p1099_p11  ;;  %p850_p13 = scmp.ne.s32.totalorder %s193_s9, %s849_s11 }
  0x38   : > { %s956_s18 = smov [#allocation2]  }
  0x39   : > { %p852_p0 = pnand %p850_p13, %p838_p2  ;;  %s854_s25 = sshll.u32 %s956_s18, 4  ;;  %s855_s25 = int_to_ptr.vmem [resolvable:$false] %s854_s25 }
  0x3a   : > { %s856_s27 = scalar_lea.vmem %s855_s25, 512  ;;  %p857_p10 = scmp.lt.s32.totalorder %s193_s9, %s855_s25 }
  0x3b   : > { %p853_p5 = pneg %p852_p0  ;;  %p858_p1 = scmp.lt.s32.totalorder %s856_s27, %s849_s11 }
  0x3d   : > { %p859_p4 = por %p858_p1, %p857_p10 }
  0x3f   : > { %p860_p6 = pnand %p859_p4, %p853_p5 }
  0x41   : > { %863 = shalt.err (!%p860_p6)
}
  0x42   : > { %709 = dma.hbm_to_vmem [thread:$0]  (!%p1099_p11), %s190_s7, 256, %s193_s9, %s181_s10  }
  0x43   : > { %201 = sbr.rel (%p1042_p8) target bundleno = 434 (0x1b2), region = 32  ;;  %s1110_s28 = sand.u32 (!%p1042_p8), 1, %s932_s13  }
  0x44   : > { %s656_s29 = sshll.u32 (!%p1042_p8), %s1110_s28, 4  ;;  %s204_s30 = scalar_lea.sflag (!%p1042_p8), [#allocation3], %s1110_s28 }
  0x45   : > { %s207_s5 = scalar_lea.vmem (!%p1042_p8), [#allocation2], %s656_s29  ;;  %p1253_p12 = scmp.ne.s32.totalorder (!%p1042_p8), %s1247_s22, 0 }
  0x48   : > { %915 = dma.done.wait (%p1253_p12), %s204_s30, 256  }
  0x49   : > { %917 = vsyncadd (%p1253_p12), %s204_s30, 4294967040  ;;  %p1254_p3 = scmp.ne.s32.totalorder %s1245_s20, 0 }
  0x4b   : > { %919 = dma.done.wait (%p1254_p3), [#allocation6], 768  }
  0x4c   : > { %921 = vsyncadd (%p1254_p3), [#allocation6], 4294966528  ;;  %v1122_v0 = vld [vmem:[%s207_s5] sm:$0xff]  ;;  %s957_s24 = smov 112   ;;  %s958_s6 = smov 111   ;;  %v1126_v1 = vld [vmem:[%s207_s5 + $0x8] sm:$0xff]  ;;  %v246_v3 = vlaneseq }
  0x4d   : > { %390 = vrot.lane.b32.xlu1 %v1122_v0, %s957_s24  ;;  %412 = vrot.lane.b32.xlu0 %v1122_v0, %s958_s6  ;;  %s959_s22 = smov 113   ;;  %s960_s20 = smov 127   ;;  %v962_v2 = vmov 0.0   ;;  %v420_v8 = vld [vmem:[#allocation7 + $0x10] ss:$8 sm:$0x3] }
  0x4e   : > { %s961_s7 = smov 1   ;;  %507 = vmatprep.mubr.f32.mxu0 %v962_v2  ;;  %513 = vmatprep.mubr.f32.mxu1 %v962_v2  ;;  %s963_s8 = smov 15   ;;  %v254_v4 = vshrl.u32 %v246_v3, 7  ;;  %v1144_v5 = vand.u32 127, %v246_v3  ;;  %vm436_vm8 = vcmask 588800  }
  0x4f   : > { %s964_s9 = smov 16   ;;  %s965_s21 = smov 17   ;;  %v398_v11 = vld [vmem:[#allocation7 + $0x7] ss:$8 sm:$0x3] }
  0x50   : > { %v1146_v6 = vsub.s32 0, %v254_v4  ;;  %v1148_v7 = vsub.s32 1, %v254_v4  ;;  %vm394_vm0 = vcmp.lt.s32.totalorder %v1144_v5, 112  ;;  %vm416_vm1 = vcmp.lt.s32.totalorder %v1144_v5, 111  ;;  %s659_s10 = sshll.u32 %s1110_s28, 5  ;;  %s668_s25 = sshll.u32 %s940_s15, 9 }
  0x51   : > { %392 = vrot.lane.b32.xlu1 %v1126_v1, %s957_s24  ;;  %414 = vrot.lane.b32.xlu0 %v1126_v1, %s958_s6  ;;  %v376_v13 = vld [vmem:[#allocation7 + $0x6] ss:$8 sm:$0x3]  ;;  %vm372_vm2 = vcmp.lt.s32.totalorder %v1144_v5, 113  ;;  %vm350_vm3 = vcmp.lt.s32.totalorder %v1144_v5, 127  ;;  %vm313_vm4 = vcmp.lt.s32.totalorder %v1144_v5, 1  ;;  %s1189_s30 = scalar_lea.hbm %s1241_s3, %s668_s25 }
  0x52   : > { %v429_v12 = vrot.slane %v420_v8, %v1148_v7  ;;  %v425_v14 = vrot.slane %v420_v8, %v1146_v6  ;;  %v403_v15 = vrot.slane %v398_v11, %v1146_v6  ;;  %v407_v16 = vrot.slane %v398_v11, %v1148_v7  ;;  %v354_v23 = vld [vmem:[#allocation7 + $0x5] ss:$8 sm:$0x3]  ;;  %v332_v28 = vld [vmem:[#allocation7 + $0x4] ss:$8 sm:$0x3] }
  0x53   : > { %v381_v22 = vrot.slane %v376_v13, %v1146_v6  ;;  %v385_v26 = vrot.slane %v376_v13, %v1148_v7  ;;  %v359_v32 = vrot.slane %v354_v23, %v1146_v6  ;;  %v363_v33 = vrot.slane %v354_v23, %v1148_v7  ;;  %v317_v39 = vld [vmem:[#allocation7 + $0x3] ss:$8 sm:$0x3]  ;;  %v295_v51 = vld [vmem:[#allocation7 + $0x2] ss:$8 sm:$0x3] }
  0x54   : > { %v341_v40 = vrot.slane %v332_v28, %v1148_v7  ;;  %v337_v41 = vrot.slane %v332_v28, %v1146_v6  ;;  %v322_v46 = vrot.slane %v317_v39, %v1146_v6  ;;  %v326_v49 = vrot.slane %v317_v39, %v1148_v7  ;;  %v273_v61 = vld [vmem:[#allocation7 + $0x1] ss:$8 sm:$0x3]  ;;  %s237_s11 = scalar_lea.vmem [#allocation8], %s659_s10  ;;  %s525_s5 = scalar_lea.sflag [#allocation4], %s1110_s28 }
  0x55   : > { %370 = vrot.lane.b32.xlu1 %v1126_v1, %s959_s22  ;;  %368 = vrot.lane.b32.xlu0 %v1122_v0, %s959_s22  ;;  %v300_v57 = vrot.slane %v295_v51, %v1146_v6  ;;  %vm291_vm5 = vcmp.lt.s32.totalorder %v1144_v5, 15  ;;  %v304_v60 = vrot.slane %v295_v51, %v1148_v7  ;;  %vm269_vm6 = vcmp.lt.s32.totalorder %v1144_v5, 16  ;;  %s541_s18 = sshll.u32 %s237_s11, 4  ;;  %s966_s24 = smov [#allocation8]   ;;  %s1184_s18 = int_to_ptr.vmem [resolvable:$true] %s541_s18 }
  0x56   : > { %v345_v50 = vmul.f32 %v341_v40, %v1126_v1  ;;  %v344_v52 = vmul.f32 %v337_v41, %v1122_v0  ;;  %v278_v4 = vrot.slane %v273_v61, %v1146_v6  ;;  %v282_v8 = vrot.slane %v273_v61, %v1148_v7  ;;  %s864_s15 = scalar_lea.vmem %s1184_s18, 512  ;;  %s868_s6 = sshll.u32 %s966_s24, 4  ;;  %s869_s6 = int_to_ptr.vmem [resolvable:$false] %s868_s6 }
  0x57   : > { %vm248_vm7 = vcmp.lt.s32.totalorder %v1144_v5, 17  ;;  %v435_v5 = vld [vmem:[#allocation5 + $0x8] sm:$0xff]  ;;  %p865_p8 = scmp.ne.s32.totalorder %s1184_s18, %s864_s15  ;;  %s870_s22 = scalar_lea.vmem %s869_s6, 1024 }
  0x58   : > { %p871_p2 = scmp.lt.s32.totalorder %s1184_s18, %s869_s6  ;;  %p872_p13 = scmp.lt.s32.totalorder %s870_s22, %s864_s15 }
  0x59   : > { %348 = vrot.lane.b32.xlu1 %v1126_v1, %s960_s20  ;;  %346 = vrot.lane.b32.xlu0 %v1122_v0, %s960_s20  ;;  %p866_p9 = pnand %p865_p8, %p1083_p7 }
  0x5a   : > { %p873_p0 = por %p872_p13, %p871_p2 }
  0x5b   : > { %p867_p11 = pneg %p866_p9 }
  0x5d   : > { %311 = vrot.lane.b32.xlu1 %v1126_v1, %s961_s7  ;;  %309 = vrot.lane.b32.xlu0 %v1122_v0, %s961_s7  ;;  %p874_p5 = pnand %p873_p0, %p867_p11 }
  0x61   : > { %289 = vrot.lane.b32.xlu1 %v1126_v1, %s963_s8  ;;  %287 = vrot.lane.b32.xlu0 %v1122_v0, %s963_s8 }
  0x65   : > { %267 = vrot.lane.b32.xlu1 %v1126_v1, %s964_s9  ;;  %265 = vrot.lane.b32.xlu0 %v1122_v0, %s964_s9 }
  0x69   : > { %244 = vrot.lane.b32.xlu1 %v1126_v1, %s965_s21  ;;  %242 = vrot.lane.b32.xlu0 %v1122_v0, %s965_s21 }
  0xbf   : > { %v391_v9 = vpop.permute.xlu1 %390  ;;  %v413_v10 = vpop.permute.xlu0 %412 }
  0xc3   : > { %v393_v17 = vpop.permute.xlu1 %392  ;;  %v415_v18 = vpop.permute.xlu0 %414 }
  0xc4   : > { %v396_v19 = vsel %vm394_vm0, %v393_v17, %v391_v9  ;;  %v417_v20 = vsel %vm416_vm1, %v413_v10, %v415_v18  ;;  %v418_v21 = vsel %vm416_vm1, %v415_v18, %v413_v10  ;;  %v395_v24 = vsel %vm394_vm0, %v391_v9, %v393_v17  ;;  %v251_v9 = vld [vmem:[#allocation7] ss:$8 sm:$0x3] }
  0xc5   : > { %v433_v25 = vmul.f32 %v429_v12, %v418_v21  ;;  %v432_v27 = vmul.f32 %v425_v14, %v417_v20  ;;  %v411_v29 = vmul.f32 %v407_v16, %v396_v19  ;;  %v410_v34 = vmul.f32 %v403_v15, %v395_v24  ;;  %v434_v24 = vld [vmem:[#allocation5] sm:$0xff] }
  0xc6   : > { %v256_v16 = vrot.slane %v251_v9, %v1146_v6  ;;  %v260_v17 = vrot.slane %v251_v9, %v1148_v7 }
  0xc7   : > { %v371_v30 = vpop.permute.xlu1 %370  ;;  %457 = vmatprep.subr.mxu0 %v433_v25  ;;  %669 = vmatprep.subr.mxu1 %v433_v25  ;;  %v369_v31 = vpop.permute.xlu0 %368 }
  0xc8   : > { %v373_v35 = vsel %vm372_vm2, %v369_v31, %v371_v30  ;;  %v374_v36 = vsel %vm372_vm2, %v371_v30, %v369_v31  ;;  %458 = vmatpush1.msra.mxu0 %v432_v27  ;;  %678 = vmatpush1.msra.mxu1 %v432_v27 }
  0xc9   : > { %v388_v37 = vmul.f32 %v381_v22, %v373_v35  ;;  %v389_v38 = vmul.f32 %v385_v26, %v374_v36  ;;  %459 = vmatprep.subr.mxu0 %v411_v29  ;;  %670 = vmatprep.subr.mxu1 %v411_v29 }
  0xca   : > { %460 = vmatpush1.msra.mxu0 %v410_v34  ;;  %679 = vmatpush1.msra.mxu1 %v410_v34 }
  0xcb   : > { %v349_v42 = vpop.permute.xlu1 %348  ;;  %461 = vmatprep.subr.mxu0 %v389_v38  ;;  %671 = vmatprep.subr.mxu1 %v389_v38  ;;  %v347_v43 = vpop.permute.xlu0 %346 }
  0xcc   : > { %v351_v44 = vsel %vm350_vm3, %v347_v43, %v349_v42  ;;  %v352_v45 = vsel %vm350_vm3, %v349_v42, %v347_v43  ;;  %462 = vmatpush1.msra.mxu0 %v388_v37  ;;  %680 = vmatpush1.msra.mxu1 %v388_v37 }
  0xcd   : > { %v366_v47 = vmul.f32 %v359_v32, %v351_v44  ;;  %v367_v48 = vmul.f32 %v363_v33, %v352_v45 }
  0xcf   : > { %v312_v53 = vpop.permute.xlu1 %311  ;;  %463 = vmatprep.subr.mxu0 %v367_v48  ;;  %672 = vmatprep.subr.mxu1 %v367_v48  ;;  %v310_v54 = vpop.permute.xlu0 %309 }
  0xd0   : > { %v314_v55 = vsel %vm313_vm4, %v310_v54, %v312_v53  ;;  %v315_v56 = vsel %vm313_vm4, %v312_v53, %v310_v54  ;;  %464 = vmatpush1.msra.mxu0 %v366_v47  ;;  %681 = vmatpush1.msra.mxu1 %v366_v47 }
  0xd1   : > { %v329_v58 = vmul.f32 %v322_v46, %v315_v56  ;;  %v330_v59 = vmul.f32 %v326_v49, %v314_v55  ;;  %465 = vmatprep.subr.mxu0 %v345_v50  ;;  %673 = vmatprep.subr.mxu1 %v345_v50 }
  0xd2   : > { %466 = vmatpush1.msra.mxu0 %v344_v52  ;;  %682 = vmatpush1.msra.mxu1 %v344_v52 }
  0xd3   : > { %v290_v62 = vpop.permute.xlu1 %289  ;;  %v288_v63 = vpop.permute.xlu0 %287  ;;  %467 = vmatprep.subr.mxu0 %v330_v59  ;;  %674 = vmatprep.subr.mxu1 %v330_v59 }
  0xd4   : > { %v292_v0 = vsel %vm291_vm5, %v288_v63, %v290_v62  ;;  %v293_v1 = vsel %vm291_vm5, %v290_v62, %v288_v63  ;;  %468 = vmatpush1.msra.mxu0 %v329_v58  ;;  %683 = vmatpush1.msra.mxu1 %v329_v58 }
  0xd5   : > { %v307_v2 = vmul.f32 %v300_v57, %v293_v1  ;;  %v308_v3 = vmul.f32 %v304_v60, %v292_v0 }
  0xd7   : > { %v268_v10 = vpop.permute.xlu1 %267  ;;  %v266_v11 = vpop.permute.xlu0 %265  ;;  %469 = vmatprep.subr.mxu0 %v308_v3  ;;  %675 = vmatprep.subr.mxu1 %v308_v3 }
  0xd8   : > { %v270_v12 = vsel %vm269_vm6, %v266_v11, %v268_v10  ;;  %v271_v13 = vsel %vm269_vm6, %v268_v10, %v266_v11  ;;  %470 = vmatpush1.msra.mxu0 %v307_v2  ;;  %684 = vmatpush1.msra.mxu1 %v307_v2 }
  0xd9   : > { %v285_v14 = vmul.f32 %v278_v4, %v271_v13  ;;  %v286_v15 = vmul.f32 %v282_v8, %v270_v12 }
  0xdb   : > { %v245_v18 = vpop.permute.xlu1 %244  ;;  %v243_v19 = vpop.permute.xlu0 %242  ;;  %471 = vmatprep.subr.mxu0 %v286_v15  ;;  %676 = vmatprep.subr.mxu1 %v286_v15 }
  0xdc   : > { %v249_v20 = vsel %vm248_vm7, %v243_v19, %v245_v18  ;;  %v250_v21 = vsel %vm248_vm7, %v245_v18, %v243_v19  ;;  %472 = vmatpush1.msra.mxu0 %v285_v14  ;;  %685 = vmatpush1.msra.mxu1 %v285_v14 }
  0xdd   : > { %v263_v22 = vmul.f32 %v256_v16, %v250_v21  ;;  %v264_v23 = vmul.f32 %v260_v17, %v249_v20 }
  0xdf   : > { %473 = vmatprep.subr.mxu0 %v264_v23  ;;  %677 = vmatprep.subr.mxu1 %v264_v23 }
  0xe0   : > { %474 = vmatpush1.msra.mxu0 %v263_v22  ;;  %686 = vmatpush1.msra.mxu1 %v263_v22 }
  0xe1   : > { %660 = vmatmul.mubr.msk.f32.vlgmr.msra.gmra.mxu0 %vm436_vm8, %v434_v24  ;;  %661 = vmatmul.mubr.msk.f32.vlgmr.msra.gmra.mxu1 %vm436_vm8, %v435_v5 }
 0x1a1   : > { %v509_v6 = vpop.f32.mrf.mxu0  ;;  %v515_v7 = vpop.f32.mrf.mxu1 }
 0x1a2   : > { %520 = vst [vmem:[%s237_s11] sm:$0xff] %v509_v6  ;;  %522 = vst [vmem:[%s237_s11 + $0x10] sm:$0xff] %v515_v7 }
 0x1a3   : > { %v511_v25 = vpop.f32.mrf.mxu0  ;;  %v517_v26 = vpop.f32.mrf.mxu1 }
 0x1a4   : > { %521 = vst [vmem:[%s237_s11 + $0x8] sm:$0xff] %v511_v25  ;;  %523 = vst [vmem:[%s237_s11 + $0x18] sm:$0xff] %v517_v26 }
 0x1a5   : > { %877 = shalt.err (!%p874_p5)
}
 0x1a6   : > { %s878_s20 = scalar_lea.hbm %s1189_s30, 512  ;;  %s882_s21 = scalar_lea.hbm %s1241_s3, 1024 }
 0x1a7   : > { %p879_p10 = scmp.ne.s32.totalorder %s1189_s30, %s878_s20  ;;  %p883_p6 = scmp.lt.s32.totalorder %s1189_s30, %s1241_s3 }
 0x1a8   : > { %p884_p12 = scmp.lt.s32.totalorder %s882_s21, %s878_s20 }
 0x1a9   : > { %p880_p1 = pnand %p879_p10, %p1083_p7 }
 0x1aa   : > { %p885_p3 = por %p884_p12, %p883_p6 }
 0x1ab   : > { %p881_p4 = pneg %p880_p1 }
 0x1ad   : > { %p886_p8 = pnand %p885_p3, %p881_p4 }
 0x1af   : > { %889 = shalt.err (!%p886_p8)
}
 0x1b0   : > { %s967_s25 = smov 256  }
 0x1b1   : > { %697 = dma.vmem_to_hbm [thread:$0]  (%p1083_p7), %s1184_s18, 512, %s1189_s30, %s525_s5, %s967_s25, %s967_s25, %s964_s9  }
 0x1b2 PF: > { %s556_s27 = sand.u32 1, %s928_s12   ;;  %p1255_p9 = scmp.ne.s32.totalorder %s1248_s23, 0 }
 0x1b3   : > { %p1256_p11 = scmp.ge.s32.totalorder %s948_s17, 2  ;;  %s557_s29 = scalar_lea.sflag [#allocation4], %s556_s27 }
 0x1b5   : > { %p711_p2 = pnand %p1256_p11, %p1255_p9 }
 0x1b7   : > { %p712_p13 = pneg %p711_p2 }
 0x1b9   : > { %923 = dma.done.wait (%p712_p13), %s557_s29, 512  }
 0x1ba   : > { %925 = vsyncadd (%p712_p13), %s557_s29, 4294966784  ;;  %s20_s17 = sadd.s32 1, %s948_s17   ;;  %s1257_s12 = smov %s932_s13 }
 0x1bb   : > { %p17_p0 = scmp.ge.s32.totalorder %s20_s17, 4   ;;  %s1258_s13 = smov %s936_s14 }
 0x1bc   : > { %s1259_s14 = smov %s1092_s4  ;;  %s1260_s15 = smov %s944_s16 }
 0x1bd   : > { %s1261_s16 = smov %s1263_s19  ;;  %19 = sbr.rel (!%p17_p0) target bundleno = 7 (0x7), region = 94 }
 0x1c2   :  { %562 = vsyncpa [#allocation3], 1 }
 0x1c3   :  { %564 = vsyncpa [#allocation3 + $0x1], 1 }
 0x1c4   :  { %565 = vsyncpa [#allocation6], 1 }
 0x1c5   :  { %566 = vsyncpa [#allocation4], 1 }
 0x1c6   :  { %568 = vsyncpa [#allocation4 + $0x1], 1 }

</bundles_post_ra>
